<compile_context>
chip_gen: v6e
topology: v6e:2x2x1
jax: 0.10.0
libtpu: 0.0.40
codegen_flags: <defaults>
</compile_context>

<pallas_src>
import functools

import jax
import jax.numpy as jnp
from jax.experimental import pallas as pl
from jax.experimental.pallas import tpu as pltpu

_LANE = 128


def _round_up(n, m):
    return ((n + m - 1) // m) * m


def _cdiv(a, b):
    return -(-a // b)


def _supports_bf16_epilogue():
    """bf16 VALU exists on v6e/v7x; v5e and older lack it (keep f32 there)."""
    try:
        kind = jax.devices()[0].device_kind.lower()
    except Exception:
        return False
    return not any(old in kind for old in ("v2", "v3", "v4", "v5"))


def _choose_batch_tile(B, max_tile):
    """Adaptive tile: >=2 tiles when possible (v7x dual-TC), capped at max_tile."""
    target_tiles = max(2, _cdiv(B, max_tile))
    tile = _round_up(_cdiv(B, target_tiles), 16)
    return max(16, min(tile, max_tile))


def _ae_kernel(x_ref,
               w1, w2, w3, w4, w5, w6, w7, w8,   # (in_pad, out_pad) compute dtype
               b_ref,                            # (8, max_out_pad) epilogue dtype
               enc_ref, dec_ref):
    """Fused forward (encoder + decoder) for one batch tile."""
    compute_dtype = x_ref.dtype
    epi_dtype = b_ref.dtype                      # f32 on v5e, bf16 on v6e/v7x
    h = x_ref[...]
    y = None
    for l, w_ref in enumerate((w1, w2, w3, w4, w5, w6, w7, w8)):
        out_w = w_ref.shape[1]                   # padded (multiple of 128)
        y = jnp.dot(h, w_ref[...], preferred_element_type=jnp.float32)
        y = y.astype(epi_dtype) + b_ref[l:l + 1, :out_w]   # bias-add
        y = jnp.maximum(y, jnp.zeros((), epi_dtype))       # ReLU
        if l == 3:                               # encoder output (layer 4)
            enc_ref[...] = y.astype(enc_ref.dtype)
        if l < 7:                                # no dead cast after last layer
            h = y.astype(compute_dtype)
    dec_ref[...] = y.astype(dec_ref.dtype)       # decoder output (layer 8)


def prepare_params(params, *, compute_dtype=jnp.bfloat16, epilogue_dtype=None):
    """One-time prep: params = list of 8 (W, b) with W in PyTorch (out, in) layout.

    Returns (w_pads, b_pad, meta) reusable across forward calls.
    """
    assert len(params) == 8
    dims = [(int(w.shape[1]), int(w.shape[0])) for (w, _) in params]
    pad_in = [_round_up(d, _LANE) for (d, _) in dims]
    pad_out = [_round_up(d, _LANE) for (_, d) in dims]
    max_out = max(pad_out)

    compute_dtype = jnp.dtype(compute_dtype)
    if epilogue_dtype is None:
        epilogue_dtype = (jnp.bfloat16
                          if (compute_dtype == jnp.bfloat16 and _supports_bf16_epilogue())
                          else jnp.float32)
    if compute_dtype == jnp.float32:             # exact validation path
        epilogue_dtype = jnp.float32

    w_pads, b_rows = [], []
    for l, (w, b) in enumerate(params):
        wt = jnp.asarray(w, jnp.float32).T       # (in, out)
        w_pads.append(
            jnp.pad(wt, ((0, pad_in[l] - wt.shape[0]),
                         (0, pad_out[l] - wt.shape[1]))).astype(compute_dtype))
        b_rows.append(jnp.pad(jnp.asarray(b, jnp.float32),
                              (0, max_out - b.shape[0])))
    b_pad = jnp.stack(b_rows, axis=0).astype(epilogue_dtype)   # (8, max_out)

    meta = dict(input_dim=dims[0][0], enc_dim=dims[3][1], dec_dim=dims[7][1])
    return tuple(w_pads), b_pad, meta


@functools.partial(
    jax.jit,
    static_argnames=("input_dim", "enc_dim", "dec_dim", "out_dtype", "max_batch_tile"))
def _forward(x, w_pads, b_pad, *, input_dim, enc_dim, dec_dim, out_dtype,
             max_batch_tile):
    B = x.shape[0]
    compute_dtype = w_pads[0].dtype
    pad_in0 = w_pads[0].shape[0]
    pad_out_enc = w_pads[3].shape[1]
    pad_out_dec = w_pads[7].shape[1]

    tile = _choose_batch_tile(B, max_batch_tile)
    grid_n = _cdiv(B, tile)
    B_pad = tile * grid_n

    # Single fused pad (no zeros + scatter round-trip through HBM).
    x_pad = jnp.pad(x.astype(compute_dtype),
                    ((0, B_pad - B), (0, pad_in0 - input_dim)))

    x_spec = pl.BlockSpec((tile, pad_in0), lambda i: (i, 0))
    w_specs = [pl.BlockSpec(wp.shape, lambda i: (0, 0)) for wp in w_pads]
    b_spec = pl.BlockSpec(b_pad.shape, lambda i: (0, 0))
    enc_spec = pl.BlockSpec((tile, pad_out_enc), lambda i: (i, 0))
    dec_spec = pl.BlockSpec((tile, pad_out_dec), lambda i: (i, 0))

    out_shapes = (
        jax.ShapeDtypeStruct((B_pad, pad_out_enc), out_dtype),
        jax.ShapeDtypeStruct((B_pad, pad_out_dec), out_dtype),
    )

    # Advisory cost estimate for the XLA scheduler.
    weight_elems = sum(int(wp.shape[0]) * int(wp.shape[1]) for wp in w_pads)
    in_itemsize = jnp.dtype(compute_dtype).itemsize
    out_itemsize = jnp.dtype(out_dtype).itemsize
    cost = pl.CostEstimate(
        flops=2 * B_pad * weight_elems,
        transcendentals=0,
        bytes_accessed=(B_pad * pad_in0 * in_itemsize
                        + weight_elems * in_itemsize
                        + int(b_pad.size) * jnp.dtype(b_pad.dtype).itemsize
                        + B_pad * (pad_out_enc + pad_out_dec) * out_itemsize))

    fn = pl.pallas_call(
        _ae_kernel,
        out_shape=out_shapes,
        grid_spec=pltpu.PrefetchScalarGridSpec(
            num_scalar_prefetch=0,
            grid=(grid_n,),
            in_specs=[x_spec] + w_specs + [b_spec],
            out_specs=[enc_spec, dec_spec],
        ),
        compiler_params=pltpu.CompilerParams(
            dimension_semantics=("parallel",)),
        cost_estimate=cost,
    )
    enc_full, dec_full = fn(x_pad, *w_pads, b_pad)
    # Slices fuse under jit; strip batch + lane padding.
    return enc_full[:B, :enc_dim], dec_full[:B, :dec_dim]


def anime_autoencoder_forward(x, prepared, *, out_dtype=jnp.bfloat16,
                              max_batch_tile=1024):
    """Forward pass. prepared = prepare_params(params, ...). Returns (enc, dec)."""
    w_pads, b_pad, meta = prepared
    assert x.shape[1] == meta["input_dim"]
    return _forward(x, w_pads, b_pad,
                    input_dim=meta["input_dim"],
                    enc_dim=meta["enc_dim"],
                    dec_dim=meta["dec_dim"],
                    out_dtype=jnp.dtype(out_dtype),
                    max_batch_tile=int(max_batch_tile))


def init_params(key, input_dim, encoding_dim):
    """Deterministic init of the 8 Linear layers (PyTorch (out, in) layout)."""
    dims = [
        (input_dim, encoding_dim * 2),
        (encoding_dim * 2, encoding_dim),
        (encoding_dim, encoding_dim // 2),
        (encoding_dim // 2, encoding_dim // 4),
        (encoding_dim // 4, encoding_dim // 2),
        (encoding_dim // 2, encoding_dim),
        (encoding_dim, encoding_dim * 2),
        (encoding_dim * 2, input_dim),
    ]
    params = []
    for (fan_in, fan_out) in dims:
        key, kw, kb = jax.random.split(key, 3)
        bound = 1.0 / jnp.sqrt(fan_in)
        w = jax.random.uniform(kw, (fan_out, fan_in), jnp.float32, -bound, bound)
        b = jax.random.uniform(kb, (fan_out,), jnp.float32, -bound, bound)
        params.append((w, b))
    return params


def reference_forward(x, params):
    """Pure-JAX f32 reference matching the PyTorch module semantics."""
    h = x
    enc = None
    for i, (w, b) in enumerate(params):
        h = jnp.maximum(h @ w.T + b, 0.0)
        if i == 3:
            enc = h
    return enc, h


if __name__ == "__main__":
    input_dim = 64
    encoding_dim = 32
    batch = 100          # not a tile multiple -> padding path; adaptive tile -> grid of 2

    key = jax.random.PRNGKey(0)
    key, kx = jax.random.split(key)
    x = jax.random.normal(kx, (batch, input_dim), jnp.float32)
    params = init_params(key, input_dim, encoding_dim)

    enc_ref_v, dec_ref_v = reference_forward(x, params)

    # 1) f32 compute + f32 outputs: tight semantic check against the reference.
    prep32 = prepare_params(params, compute_dtype=jnp.float32)
    enc32, dec32 = anime_autoencoder_forward(x, prep32, out_dtype=jnp.float32)
    jax.block_until_ready((enc32, dec32))
    assert enc32.shape == (batch, encoding_dim // 4)
    assert dec32.shape == (batch, input_dim)
    assert jnp.allclose(enc32, enc_ref_v, atol=1e-4, rtol=1e-4)
    assert jnp.allclose(dec32, dec_ref_v, atol=1e-4, rtol=1e-4)

    # 2) Fast path: bf16 matmul operands, bf16 outputs, bf16 epilogue on v6e/v7x
    #    (f32 epilogue automatically kept on v5e and older).
    prep16 = prepare_params(params, compute_dtype=jnp.bfloat16)
    enc16, dec16 = anime_autoencoder_forward(x, prep16, out_dtype=jnp.bfloat16)
    jax.block_until_ready((enc16, dec16))
    assert enc16.shape == (batch, encoding_dim // 4)
    assert dec16.shape == (batch, input_dim)
    assert jnp.allclose(enc16.astype(jnp.float32), enc_ref_v, atol=1e-1, rtol=1e-1)
    assert jnp.allclose(dec16.astype(jnp.float32), dec_ref_v, atol=1e-1, rtol=1e-1)

    print("KERNEL_OK")
</pallas_src>

<mosaic_0001>
module attributes {stable_mosaic.version = 11 : i64} {
  func.func @_ae_kernel(%arg0: i32, %arg1: memref<64x128xf32, #tpu.memory_space<vmem>>, %arg2: memref<128x128xf32, #tpu.memory_space<vmem>>, %arg3: memref<128x128xf32, #tpu.memory_space<vmem>>, %arg4: memref<128x128xf32, #tpu.memory_space<vmem>>, %arg5: memref<128x128xf32, #tpu.memory_space<vmem>>, %arg6: memref<128x128xf32, #tpu.memory_space<vmem>>, %arg7: memref<128x128xf32, #tpu.memory_space<vmem>>, %arg8: memref<128x128xf32, #tpu.memory_space<vmem>>, %arg9: memref<128x128xf32, #tpu.memory_space<vmem>>, %arg10: memref<8x128xf32, #tpu.memory_space<vmem>>, %arg11: memref<64x128xf32, #tpu.memory_space<vmem>>, %arg12: memref<64x128xf32, #tpu.memory_space<vmem>>) attributes {dimension_semantics = [#tpu.dimension_semantics<parallel>], iteration_bounds = array<i64: 2>, scalar_prefetch = 0 : i64, scratch_operands = 0 : i64, tpu.core_type = #tpu.core_type<tc>, window_params = [{transform_indices = @transform_0, window_bounds = array<i64: 64, 128>}, {pipeline_mode = #tpu.pipeline_mode<synchronous>, transform_indices = @transform_1, window_bounds = array<i64: 128, 128>}, {pipeline_mode = #tpu.pipeline_mode<synchronous>, transform_indices = @transform_2, window_bounds = array<i64: 128, 128>}, {pipeline_mode = #tpu.pipeline_mode<synchronous>, transform_indices = @transform_3, window_bounds = array<i64: 128, 128>}, {pipeline_mode = #tpu.pipeline_mode<synchronous>, transform_indices = @transform_4, window_bounds = array<i64: 128, 128>}, {pipeline_mode = #tpu.pipeline_mode<synchronous>, transform_indices = @transform_5, window_bounds = array<i64: 128, 128>}, {pipeline_mode = #tpu.pipeline_mode<synchronous>, transform_indices = @transform_6, window_bounds = array<i64: 128, 128>}, {pipeline_mode = #tpu.pipeline_mode<synchronous>, transform_indices = @transform_7, window_bounds = array<i64: 128, 128>}, {pipeline_mode = #tpu.pipeline_mode<synchronous>, transform_indices = @transform_8, window_bounds = array<i64: 128, 128>}, {pipeline_mode = #tpu.pipeline_mode<synchronous>, transform_indices = @transform_9, window_bounds = array<i64: 8, 128>}, {transform_indices = @transform_10, window_bounds = array<i64: 64, 128>}, {transform_indices = @transform_11, window_bounds = array<i64: 64, 128>}]} {
    %c0 = arith.constant 0 : index
    %c0_0 = arith.constant 0 : index
    %0 = vector.load %arg1[%c0, %c0_0] : memref<64x128xf32, #tpu.memory_space<vmem>>, vector<64x128xf32>
    %c0_1 = arith.constant 0 : index
    %c0_2 = arith.constant 0 : index
    %1 = vector.load %arg2[%c0_1, %c0_2] : memref<128x128xf32, #tpu.memory_space<vmem>>, vector<128x128xf32>
    %cst = arith.constant dense<0.000000e+00> : vector<64x128xf32>
    %2 = tpu.matmul %0, %1, %cst {dimension_numbers = #tpu.dot_dimension_numbers<[1], [0], [0], [1], [0, 0, 1, 1], [], []>} : vector<64x128xf32>, vector<128x128xf32>, vector<64x128xf32> -> vector<64x128xf32>
    %c0_3 = arith.constant 0 : index
    %c0_4 = arith.constant 0 : index
    %3 = vector.load %arg10[%c0_3, %c0_4] : memref<8x128xf32, #tpu.memory_space<vmem>>, vector<1x128xf32>
    %4 = vector.broadcast %3 : vector<1x128xf32> to vector<64x128xf32>
    %5 = arith.addf %2, %4 : vector<64x128xf32>
    %cst_5 = arith.constant 0.000000e+00 : f32
    %6 = vector.broadcast %cst_5 : f32 to vector<64x128xf32>
    %7 = arith.maximumf %5, %6 : vector<64x128xf32>
    %c0_6 = arith.constant 0 : index
    %c0_7 = arith.constant 0 : index
    %8 = vector.load %arg3[%c0_6, %c0_7] : memref<128x128xf32, #tpu.memory_space<vmem>>, vector<128x128xf32>
    %cst_8 = arith.constant dense<0.000000e+00> : vector<64x128xf32>
    %9 = tpu.matmul %7, %8, %cst_8 {dimension_numbers = #tpu.dot_dimension_numbers<[1], [0], [0], [1], [0, 0, 1, 1], [], []>} : vector<64x128xf32>, vector<128x128xf32>, vector<64x128xf32> -> vector<64x128xf32>
    %c1 = arith.constant 1 : index
    %c0_9 = arith.constant 0 : index
    %10 = vector.load %arg10[%c1, %c0_9] : memref<8x128xf32, #tpu.memory_space<vmem>>, vector<1x128xf32>
    %11 = vector.broadcast %10 : vector<1x128xf32> to vector<64x128xf32>
    %12 = arith.addf %9, %11 : vector<64x128xf32>
    %cst_10 = arith.constant 0.000000e+00 : f32
    %13 = vector.broadcast %cst_10 : f32 to vector<64x128xf32>
    %14 = arith.maximumf %12, %13 : vector<64x128xf32>
    %c0_11 = arith.constant 0 : index
    %c0_12 = arith.constant 0 : index
    %15 = vector.load %arg4[%c0_11, %c0_12] : memref<128x128xf32, #tpu.memory_space<vmem>>, vector<128x128xf32>
    %cst_13 = arith.constant dense<0.000000e+00> : vector<64x128xf32>
    %16 = tpu.matmul %14, %15, %cst_13 {dimension_numbers = #tpu.dot_dimension_numbers<[1], [0], [0], [1], [0, 0, 1, 1], [], []>} : vector<64x128xf32>, vector<128x128xf32>, vector<64x128xf32> -> vector<64x128xf32>
    %c2 = arith.constant 2 : index
    %c0_14 = arith.constant 0 : index
    %17 = vector.load %arg10[%c2, %c0_14] : memref<8x128xf32, #tpu.memory_space<vmem>>, vector<1x128xf32>
    %18 = vector.broadcast %17 : vector<1x128xf32> to vector<64x128xf32>
    %19 = arith.addf %16, %18 : vector<64x128xf32>
    %cst_15 = arith.constant 0.000000e+00 : f32
    %20 = vector.broadcast %cst_15 : f32 to vector<64x128xf32>
    %21 = arith.maximumf %19, %20 : vector<64x128xf32>
    %c0_16 = arith.constant 0 : index
    %c0_17 = arith.constant 0 : index
    %22 = vector.load %arg5[%c0_16, %c0_17] : memref<128x128xf32, #tpu.memory_space<vmem>>, vector<128x128xf32>
    %cst_18 = arith.constant dense<0.000000e+00> : vector<64x128xf32>
    %23 = tpu.matmul %21, %22, %cst_18 {dimension_numbers = #tpu.dot_dimension_numbers<[1], [0], [0], [1], [0, 0, 1, 1], [], []>} : vector<64x128xf32>, vector<128x128xf32>, vector<64x128xf32> -> vector<64x128xf32>
    %c3 = arith.constant 3 : index
    %c0_19 = arith.constant 0 : index
    %24 = vector.load %arg10[%c3, %c0_19] : memref<8x128xf32, #tpu.memory_space<vmem>>, vector<1x128xf32>
    %25 = vector.broadcast %24 : vector<1x128xf32> to vector<64x128xf32>
    %26 = arith.addf %23, %25 : vector<64x128xf32>
    %cst_20 = arith.constant 0.000000e+00 : f32
    %27 = vector.broadcast %cst_20 : f32 to vector<64x128xf32>
    %28 = arith.maximumf %26, %27 : vector<64x128xf32>
    %c0_21 = arith.constant 0 : index
    %c0_22 = arith.constant 0 : index
    %29 = vector.load %arg11[%c0_21, %c0_22] : memref<64x128xf32, #tpu.memory_space<vmem>>, vector<64x128xf32>
    tpu.vector_store %arg11[%c0_21, %c0_22], %28 {strides = array<i32>} : memref<64x128xf32, #tpu.memory_space<vmem>>, vector<64x128xf32>,
    %c0_23 = arith.constant 0 : index
    %c0_24 = arith.constant 0 : index
    %30 = vector.load %arg6[%c0_23, %c0_24] : memref<128x128xf32, #tpu.memory_space<vmem>>, vector<128x128xf32>
    %cst_25 = arith.constant dense<0.000000e+00> : vector<64x128xf32>
    %31 = tpu.matmul %28, %30, %cst_25 {dimension_numbers = #tpu.dot_dimension_numbers<[1], [0], [0], [1], [0, 0, 1, 1], [], []>} : vector<64x128xf32>, vector<128x128xf32>, vector<64x128xf32> -> vector<64x128xf32>
    %c4 = arith.constant 4 : index
    %c0_26 = arith.constant 0 : index
    %32 = vector.load %arg10[%c4, %c0_26] : memref<8x128xf32, #tpu.memory_space<vmem>>, vector<1x128xf32>
    %33 = vector.broadcast %32 : vector<1x128xf32> to vector<64x128xf32>
    %34 = arith.addf %31, %33 : vector<64x128xf32>
    %cst_27 = arith.constant 0.000000e+00 : f32
    %35 = vector.broadcast %cst_27 : f32 to vector<64x128xf32>
    %36 = arith.maximumf %34, %35 : vector<64x128xf32>
    %c0_28 = arith.constant 0 : index
    %c0_29 = arith.constant 0 : index
    %37 = vector.load %arg7[%c0_28, %c0_29] : memref<128x128xf32, #tpu.memory_space<vmem>>, vector<128x128xf32>
    %cst_30 = arith.constant dense<0.000000e+00> : vector<64x128xf32>
    %38 = tpu.matmul %36, %37, %cst_30 {dimension_numbers = #tpu.dot_dimension_numbers<[1], [0], [0], [1], [0, 0, 1, 1], [], []>} : vector<64x128xf32>, vector<128x128xf32>, vector<64x128xf32> -> vector<64x128xf32>
    %c5 = arith.constant 5 : index
    %c0_31 = arith.constant 0 : index
    %39 = vector.load %arg10[%c5, %c0_31] : memref<8x128xf32, #tpu.memory_space<vmem>>, vector<1x128xf32>
    %40 = vector.broadcast %39 : vector<1x128xf32> to vector<64x128xf32>
    %41 = arith.addf %38, %40 : vector<64x128xf32>
    %cst_32 = arith.constant 0.000000e+00 : f32
    %42 = vector.broadcast %cst_32 : f32 to vector<64x128xf32>
    %43 = arith.maximumf %41, %42 : vector<64x128xf32>
    %c0_33 = arith.constant 0 : index
    %c0_34 = arith.constant 0 : index
    %44 = vector.load %arg8[%c0_33, %c0_34] : memref<128x128xf32, #tpu.memory_space<vmem>>, vector<128x128xf32>
    %cst_35 = arith.constant dense<0.000000e+00> : vector<64x128xf32>
    %45 = tpu.matmul %43, %44, %cst_35 {dimension_numbers = #tpu.dot_dimension_numbers<[1], [0], [0], [1], [0, 0, 1, 1], [], []>} : vector<64x128xf32>, vector<128x128xf32>, vector<64x128xf32> -> vector<64x128xf32>
    %c6 = arith.constant 6 : index
    %c0_36 = arith.constant 0 : index
    %46 = vector.load %arg10[%c6, %c0_36] : memref<8x128xf32, #tpu.memory_space<vmem>>, vector<1x128xf32>
    %47 = vector.broadcast %46 : vector<1x128xf32> to vector<64x128xf32>
    %48 = arith.addf %45, %47 : vector<64x128xf32>
    %cst_37 = arith.constant 0.000000e+00 : f32
    %49 = vector.broadcast %cst_37 : f32 to vector<64x128xf32>
    %50 = arith.maximumf %48, %49 : vector<64x128xf32>
    %c0_38 = arith.constant 0 : index
    %c0_39 = arith.constant 0 : index
    %51 = vector.load %arg9[%c0_38, %c0_39] : memref<128x128xf32, #tpu.memory_space<vmem>>, vector<128x128xf32>
    %cst_40 = arith.constant dense<0.000000e+00> : vector<64x128xf32>
    %52 = tpu.matmul %50, %51, %cst_40 {dimension_numbers = #tpu.dot_dimension_numbers<[1], [0], [0], [1], [0, 0, 1, 1], [], []>} : vector<64x128xf32>, vector<128x128xf32>, vector<64x128xf32> -> vector<64x128xf32>
    %c7 = arith.constant 7 : index
    %c0_41 = arith.constant 0 : index
    %53 = vector.load %arg10[%c7, %c0_41] : memref<8x128xf32, #tpu.memory_space<vmem>>, vector<1x128xf32>
    %54 = vector.broadcast %53 : vector<1x128xf32> to vector<64x128xf32>
    %55 = arith.addf %52, %54 : vector<64x128xf32>
    %cst_42 = arith.constant 0.000000e+00 : f32
    %56 = vector.broadcast %cst_42 : f32 to vector<64x128xf32>
    %57 = arith.maximumf %55, %56 : vector<64x128xf32>
    %c0_43 = arith.constant 0 : index
    %c0_44 = arith.constant 0 : index
    %58 = vector.load %arg12[%c0_43, %c0_44] : memref<64x128xf32, #tpu.memory_space<vmem>>, vector<64x128xf32>
    tpu.vector_store %arg12[%c0_43, %c0_44], %57 {strides = array<i32>} : memref<64x128xf32, #tpu.memory_space<vmem>>, vector<64x128xf32>,
    return
  }
  func.func @transform_0(%arg0: i32) -> (i32, i32) {
    %c0_i32 = arith.constant 0 : i32
    %c0_i32_0 = arith.constant 0 : i32
    return %arg0, %c0_i32 : i32, i32
  }
  func.func @transform_1(%arg0: i32) -> (i32, i32) {
    %c0_i32 = arith.constant 0 : i32
    %c0_i32_0 = arith.constant 0 : i32
    %c0_i32_1 = arith.constant 0 : i32
    return %c0_i32, %c0_i32_0 : i32, i32
  }
  func.func @transform_2(%arg0: i32) -> (i32, i32) {
    %c0_i32 = arith.constant 0 : i32
    %c0_i32_0 = arith.constant 0 : i32
    %c0_i32_1 = arith.constant 0 : i32
    return %c0_i32, %c0_i32_0 : i32, i32
  }
  func.func @transform_3(%arg0: i32) -> (i32, i32) {
    %c0_i32 = arith.constant 0 : i32
    %c0_i32_0 = arith.constant 0 : i32
    %c0_i32_1 = arith.constant 0 : i32
    return %c0_i32, %c0_i32_0 : i32, i32
  }
  func.func @transform_4(%arg0: i32) -> (i32, i32) {
    %c0_i32 = arith.constant 0 : i32
    %c0_i32_0 = arith.constant 0 : i32
    %c0_i32_1 = arith.constant 0 : i32
    return %c0_i32, %c0_i32_0 : i32, i32
  }
  func.func @transform_5(%arg0: i32) -> (i32, i32) {
    %c0_i32 = arith.constant 0 : i32
    %c0_i32_0 = arith.constant 0 : i32
    %c0_i32_1 = arith.constant 0 : i32
    return %c0_i32, %c0_i32_0 : i32, i32
  }
  func.func @transform_6(%arg0: i32) -> (i32, i32) {
    %c0_i32 = arith.constant 0 : i32
    %c0_i32_0 = arith.constant 0 : i32
    %c0_i32_1 = arith.constant 0 : i32
    return %c0_i32, %c0_i32_0 : i32, i32
  }
  func.func @transform_7(%arg0: i32) -> (i32, i32) {
    %c0_i32 = arith.constant 0 : i32
    %c0_i32_0 = arith.constant 0 : i32
    %c0_i32_1 = arith.constant 0 : i32
    return %c0_i32, %c0_i32_0 : i32, i32
  }
  func.func @transform_8(%arg0: i32) -> (i32, i32) {
    %c0_i32 = arith.constant 0 : i32
    %c0_i32_0 = arith.constant 0 : i32
    %c0_i32_1 = arith.constant 0 : i32
    return %c0_i32, %c0_i32_0 : i32, i32
  }
  func.func @transform_9(%arg0: i32) -> (i32, i32) {
    %c0_i32 = arith.constant 0 : i32
    %c0_i32_0 = arith.constant 0 : i32
    %c0_i32_1 = arith.constant 0 : i32
    return %c0_i32, %c0_i32_0 : i32, i32
  }
  func.func @transform_10(%arg0: i32) -> (i32, i32) {
    %c0_i32 = arith.constant 0 : i32
    %c0_i32_0 = arith.constant 0 : i32
    return %arg0, %c0_i32 : i32, i32
  }
  func.func @transform_11(%arg0: i32) -> (i32, i32) {
    %c0_i32 = arith.constant 0 : i32
    %c0_i32_0 = arith.constant 0 : i32
    return %arg0, %c0_i32 : i32, i32
  }
}

</mosaic_0001>

<bundles_post_ra>
// kernel: _forward.1
= control target key start
LH: loop header
LB: loop body
LE: loop exit
PB: predicated region body
PF: predicated region fallthrough
CT: control target
= control target key end

     0   :  { %17 = vsyncpa [#allocation3], 0  ;;  %s2886_s0 = inlined_call_operand.vmem [shape: f32[128,128], index: 0, kind: input, shape index: {}]   ;;  %s2887_s1 = inlined_call_operand.vmem [shape: f32[128,128], index: 1, kind: input, shape index: {}]   ;;  %s2888_s2 = inlined_call_operand.vmem [shape: f32[128,128], index: 2, kind: input, shape index: {}]   ;;  %s2889_s3 = inlined_call_operand.vmem [shape: f32[128,128], index: 3, kind: input, shape index: {}]   ;;  %s2890_s4 = inlined_call_operand.hbm [shape: f32[128,128], index: 4, kind: input, shape index: {}]   ;;  %s2891_s5 = inlined_call_operand.hbm [shape: f32[128,128], index: 5, kind: input, shape index: {}]   ;;  %s2892_s6 = inlined_call_operand.hbm [shape: f32[128,128], index: 6, kind: input, shape index: {}]   ;;  %s2893_s7 = inlined_call_operand.hbm [shape: f32[128,128], index: 7, kind: input, shape index: {}]   ;;  %s2894_s8 = inlined_call_operand.hbm [shape: f32[128,128], index: 8, kind: input, shape index: {}]   ;;  %s2895_s9 = inlined_call_operand.vmem [shape: f32[8,128], index: 9, kind: input, shape index: {}]   ;;  %s2896_s10 = inlined_call_operand.vmem [shape: f32[128,128], index: 10, kind: output, shape index: {0}]   ;;  %s2897_s11 = inlined_call_operand.vmem [shape: f32[128,128], index: 11, kind: output, shape index: {1}]  }
   0x1   :  { %18 = vsyncpa [#allocation5], 0 }
   0x2   :  { %19 = vsyncpa [#allocation8], 0  ;;  %s2566_s17 = smov 0  }
   0x3 LB: > { %s1713_s18 = sadd.s32 4294967295, %s2497_s17   ;;  %p1715_p0 = scmp.ge.s32.totalorder %s2497_s17, 1  ;;  %s2497_s17 = sphi %s2566_s17, %s25_s17  }
   0x4   : > { %p297_p1 = scmp.lt.s32.totalorder %s2497_s17, 3  ;;  %p2576_p2 = scmp.eq.s32.totalorder %s1713_s18, 0 }
   0x5   : > { %s2499_s21 = smov [#allocation4]   ;;  %s2500_s23 = smov [#allocation7]  }
   0x6   : > { %p2580_p3 = pnand %p1715_p0, %p297_p1  ;;  %s331_s22 = sshll.u32 %s2499_s21, 4  ;;  %s332_s22 = int_to_ptr.vmem [resolvable:$true] %s331_s22 }
   0x7   : > { %s357_s24 = sshll.u32 %s2500_s23, 4  ;;  %s2501_s26 = smov [#allocation2]   ;;  %s2586_s24 = int_to_ptr.vmem [resolvable:$true] %s357_s24 }
   0x8   : > { %p2308_p4 = pneg %p2580_p3  ;;  %s318_s27 = sshll.u32 %s2501_s26, 4  ;;  %s2594_s27 = int_to_ptr.vmem [resolvable:$true] %s318_s27 }
   0x9   : > { %s2502_s28 = smov [#allocation6]   ;;  %s2360_s12 = scalar_lea.vmem %s332_s22, 2048 }
   0xa   : > { %p2590_p5 = pnand %p2576_p2, %p2308_p4  ;;  %s2596_s29 = sshll.u32 %s2502_s28, 4  ;;  %s345_s29 = int_to_ptr.vmem [resolvable:$true] %s2596_s29 }
   0xb   : > { %p2361_p7 = scmp.ne.s32.totalorder %s332_s22, %s2360_s12  ;;  %p2368_p10 = scmp.lt.s32.totalorder %s332_s22, %s332_s22 }
   0xc   : > { %p2600_p6 = pneg %p2590_p5  ;;  %p2369_p11 = scmp.lt.s32.totalorder %s2360_s12, %s2360_s12 }
   0xe   : > { %p2363_p8 = pnand %p2361_p7, %p2600_p6  ;;  %p2370_p12 = por %p2369_p11, %p2368_p10 }
  0x10   : > { %p2364_p9 = pneg %p2363_p8 }
  0x12   : > { %p2371_p13 = pnand %p2370_p12, %p2364_p9 }
  0x14   : > { %2374 = shalt.err (!%p2371_p13)
}
  0x15   : > { %s2503_s13 = smov 128   ;;  %s2504_s14 = smov 8  }
  0x16   : > { %2314 = dma.hbm_to_vmem [thread:$0]  (!%p2590_p5), %s2891_s5, 2048, %s332_s22, [#allocation5], %s2503_s13, %s2503_s13, %s2504_s14  }
  0x17   : > { %s2386_s21 = scalar_lea.vmem %s2586_s24, 2048  ;;  %p2394_p7 = scmp.lt.s32.totalorder %s2586_s24, %s2586_s24 }
  0x18   : > { %p2387_p0 = scmp.ne.s32.totalorder %s2586_s24, %s2386_s21  ;;  %p2395_p8 = scmp.lt.s32.totalorder %s2386_s21, %s2386_s21 }
  0x1a   : > { %p2389_p1 = pnand %p2387_p0, %p2600_p6  ;;  %p2396_p9 = por %p2395_p8, %p2394_p7 }
  0x1c   : > { %p2390_p4 = pneg %p2389_p1 }
  0x1e   : > { %p2397_p10 = pnand %p2396_p9, %p2390_p4 }
  0x20   : > { %2400 = shalt.err (!%p2397_p10)
}
  0x21   : > { %2320 = dma.hbm_to_vmem [thread:$0]  (!%p2590_p5), %s2893_s7, 2048, %s2586_s24, [#allocation8], %s2503_s13, %s2503_s13, %s2504_s14  }
  0x22   : > { %s2412_s22 = scalar_lea.vmem %s2594_s27, 2048  ;;  %p2420_p0 = scmp.lt.s32.totalorder %s2594_s27, %s2594_s27 }
  0x23   : > { %p2413_p11 = scmp.ne.s32.totalorder %s2594_s27, %s2412_s22  ;;  %p2421_p1 = scmp.lt.s32.totalorder %s2412_s22, %s2412_s22 }
  0x25   : > { %p2415_p12 = pnand %p2413_p11, %p2600_p6  ;;  %p2422_p4 = por %p2421_p1, %p2420_p0 }
  0x27   : > { %p2416_p13 = pneg %p2415_p12 }
  0x29   : > { %p2423_p7 = pnand %p2422_p4, %p2416_p13 }
  0x2b   : > { %2426 = shalt.err (!%p2423_p7)
}
  0x2c   : > { %2311 = dma.hbm_to_vmem [thread:$0]  (!%p2590_p5), %s2890_s4, 2048, %s2594_s27, [#allocation3], %s2503_s13, %s2503_s13, %s2504_s14  }
  0x2d   : > { %s2438_s24 = scalar_lea.vmem %s345_s29, 2048  ;;  %p2446_p11 = scmp.lt.s32.totalorder %s345_s29, %s345_s29 }
  0x2e   : > { %p2439_p8 = scmp.ne.s32.totalorder %s345_s29, %s2438_s24  ;;  %p2447_p12 = scmp.lt.s32.totalorder %s2438_s24, %s2438_s24 }
  0x30   : > { %p2441_p9 = pnand %p2439_p8, %p2600_p6  ;;  %p2448_p13 = por %p2447_p12, %p2446_p11 }
  0x32   : > { %p2442_p10 = pneg %p2441_p9 }
  0x34   : > { %p2449_p0 = pnand %p2448_p13, %p2442_p10 }
  0x36   : > { %2452 = shalt.err (!%p2449_p0)
}
  0x37   : > { %2317 = dma.hbm_to_vmem [thread:$0]  (!%p2590_p5), %s2892_s6, 2048, %s345_s29, [#allocation5], %s2503_s13, %s2503_s13, %s2504_s14  }
  0x38   : > { %s2505_s27 = smov [#allocation9]  }
  0x39   : > { %s370_s21 = sshll.u32 %s2505_s27, 4  ;;  %s371_s21 = int_to_ptr.vmem [resolvable:$true] %s370_s21 }
  0x3a   : > { %s2464_s23 = scalar_lea.vmem %s371_s21, 2048  ;;  %p2472_p8 = scmp.lt.s32.totalorder %s371_s21, %s371_s21 }
  0x3b   : > { %p2465_p1 = scmp.ne.s32.totalorder %s371_s21, %s2464_s23  ;;  %p2473_p9 = scmp.lt.s32.totalorder %s2464_s23, %s2464_s23 }
  0x3d   : > { %p2467_p4 = pnand %p2465_p1, %p2600_p6  ;;  %p2474_p10 = por %p2473_p9, %p2472_p8 }
  0x3f   : > { %p2468_p7 = pneg %p2467_p4 }
  0x41   : > { %p2475_p11 = pnand %p2474_p10, %p2468_p7 }
  0x43   : > { %2478 = shalt.err (!%p2475_p11)
}
  0x44   : > { %2323 = dma.hbm_to_vmem [thread:$0]  (!%p2590_p5), %s2894_s8, 2048, %s371_s21, [#allocation8], %s2503_s13, %s2503_s13, %s2504_s14  }
  0x45   : > { %398 = sbr.rel (%p2580_p3) target bundleno = 1724 (0x6bc), region = 60 }
  0x4a   : > { %2484 = dma.done.wait (%p2576_p2), [#allocation3], 2048  }
  0x4b   : > { %2486 = vsyncadd (%p2576_p2), [#allocation3], 4294965248 }
  0x4c   : > { %2488 = dma.done.wait (%p2576_p2), [#allocation5], 4096  }
  0x4d   : > { %2490 = vsyncadd (%p2576_p2), [#allocation5], 4294963200 }
  0x4e   : > { %2492 = dma.done.wait (%p2576_p2), [#allocation8], 4096  }
  0x4f   : > { %2494 = vsyncadd (%p2576_p2), [#allocation8], 4294963200  ;;  %s1728_s20 = sshll.u32 %s1713_s18, 3  ;;  %v500_v0 = vld [vmem:[%s2887_s1 + $0x78] sm:$0xff]  ;;  %v499_v1 = vld [vmem:[%s2887_s1 + $0x70] sm:$0xff] }
  0x50   : > { %p460_p3 = scmp.lt.s32.totalorder %s1728_s20, 15  ;;  %1936 = vmatprep.subr.mxu0 %v500_v0  ;;  %v498_v2 = vld [vmem:[%s2887_s1 + $0x68] sm:$0xff]  ;;  %v497_v3 = vld [vmem:[%s2887_s1 + $0x60] sm:$0xff]  ;;  %v496_v5 = vld [vmem:[%s2887_s1 + $0x58] sm:$0xff] }
  0x51   : > { %1937 = vmatpush3.msra.mxu0 %v500_v0  ;;  %v495_v6 = vld [vmem:[%s2887_s1 + $0x50] sm:$0xff]  ;;  %v634_v7 = vld [vmem:[%s2888_s2 + $0x78] sm:$0xff]  ;;  %v494_v9 = vld [vmem:[%s2887_s1 + $0x48] sm:$0xff] }
  0x52   : > { %s2903_s20 = smov (!%p460_p3, %s1728_s20), 15  ;;  %1938 = vmatprep.subr.mxu0 %v499_v1  ;;  %v633_v8 = vld [vmem:[%s2888_s2 + $0x70] sm:$0xff]  ;;  %1980 = vmatprep.subr.mxu1 %v634_v7  ;;  %v632_v10 = vld [vmem:[%s2888_s2 + $0x68] sm:$0xff]  ;;  %v493_v11 = vld [vmem:[%s2887_s1 + $0x40] sm:$0xff] }
  0x53   : > { %s2681_s25 = sshll.u32 %s2903_s20, 3  ;;  %1939 = vmatpush3.msra.mxu0 %v499_v1  ;;  %1981 = vmatpush3.msra.mxu1 %v634_v7  ;;  %v631_v12 = vld [vmem:[%s2888_s2 + $0x60] sm:$0xff]  ;;  %v492_v13 = vld [vmem:[%s2887_s1 + $0x38] sm:$0xff]  ;;  %v491_v15 = vld [vmem:[%s2887_s1 + $0x30] sm:$0xff] }
  0x54   : > { %s2696_s24 = scalar_lea.vmem %s2886_s0, %s2681_s25  ;;  %1940 = vmatprep.subr.mxu0 %v498_v2  ;;  %1982 = vmatprep.subr.mxu1 %v633_v8  ;;  %v630_v14 = vld [vmem:[%s2888_s2 + $0x58] sm:$0xff]  ;;  %v629_v16 = vld [vmem:[%s2888_s2 + $0x50] sm:$0xff]  ;;  %v490_v17 = vld [vmem:[%s2887_s1 + $0x28] sm:$0xff]  ;;  %s2857_s16 = scalar_lea.vmem %s2896_s10, %s2681_s25 }
  0x55   : > { %v477_v4 = vld [vmem:[%s2696_s24] sm:$0xff]  ;;  %1941 = vmatpush3.msra.mxu0 %v498_v2  ;;  %1983 = vmatpush3.msra.mxu1 %v633_v8  ;;  %v628_v18 = vld [vmem:[%s2888_s2 + $0x48] sm:$0xff]  ;;  %v488_v21 = vld [vmem:[%s2887_s1 + $0x18] sm:$0xff]  ;;  %s475_s22 = scalar_lea.vmem %s2897_s11, %s2681_s25 }
  0x56   : > { %1968 = vmatprep.mubr.f32.mxu0 %v477_v4  ;;  %1942 = vmatprep.subr.mxu0 %v497_v3  ;;  %v489_v19 = vld [vmem:[%s2887_s1 + $0x20] sm:$0xff]  ;;  %v626_v22 = vld [vmem:[%s2888_s2 + $0x38] sm:$0xff]  ;;  %v487_v23 = vld [vmem:[%s2887_s1 + $0x10] sm:$0xff] }
  0x57   : > { %1943 = vmatpush3.msra.mxu0 %v497_v3  ;;  %1984 = vmatprep.subr.mxu1 %v632_v10  ;;  %v627_v20 = vld [vmem:[%s2888_s2 + $0x40] sm:$0xff]  ;;  %v625_v24 = vld [vmem:[%s2888_s2 + $0x30] sm:$0xff]  ;;  %v486_v25 = vld [vmem:[%s2887_s1 + $0x8] sm:$0xff] }
  0x58   : > { %1944 = vmatprep.subr.mxu0 %v496_v5  ;;  %1985 = vmatpush3.msra.mxu1 %v632_v10  ;;  %v624_v26 = vld [vmem:[%s2888_s2 + $0x28] sm:$0xff]  ;;  %v485_v27 = vld [vmem:[%s2887_s1] sm:$0xff]  ;;  %v479_v30 = vld [vmem:[%s2696_s24 + $0x10] sm:$0xff] }
  0x59   : > { %1945 = vmatpush3.msra.mxu0 %v496_v5  ;;  %1986 = vmatprep.subr.mxu1 %v631_v12  ;;  %v623_v28 = vld [vmem:[%s2888_s2 + $0x20] sm:$0xff]  ;;  %v478_v29 = vld [vmem:[%s2696_s24 + $0x8] sm:$0xff]  ;;  %v480_v31 = vld [vmem:[%s2696_s24 + $0x18] sm:$0xff] }
  0x5a   : > { %1946 = vmatprep.subr.mxu0 %v495_v6  ;;  %1987 = vmatpush3.msra.mxu1 %v631_v12  ;;  %v481_v32 = vld [vmem:[%s2696_s24 + $0x20] sm:$0xff]  ;;  %v482_v33 = vld [vmem:[%s2696_s24 + $0x28] sm:$0xff]  ;;  %v483_v34 = vld [vmem:[%s2696_s24 + $0x30] sm:$0xff] }
  0x5b   : > { %1947 = vmatpush3.msra.mxu0 %v495_v6  ;;  %1988 = vmatprep.subr.mxu1 %v630_v14  ;;  %v484_v35 = vld [vmem:[%s2696_s24 + $0x38] sm:$0xff]  ;;  %v621_v37 = vld [vmem:[%s2888_s2 + $0x10] sm:$0xff]  ;;  %v620_v38 = vld [vmem:[%s2888_s2 + $0x8] sm:$0xff] }
  0x5c   : > { %1948 = vmatprep.subr.mxu0 %v494_v9  ;;  %1989 = vmatpush3.msra.mxu1 %v630_v14  ;;  %v622_v36 = vld [vmem:[%s2888_s2 + $0x18] sm:$0xff]  ;;  %v619_v39 = vld [vmem:[%s2888_s2] sm:$0xff]  ;;  %v767_v41 = vld [vmem:[%s2889_s3 + $0x70] sm:$0xff] }
  0x5d   : > { %1949 = vmatpush3.msra.mxu0 %v494_v9  ;;  %1990 = vmatprep.subr.mxu1 %v629_v16  ;;  %v768_v40 = vld [vmem:[%s2889_s3 + $0x78] sm:$0xff]  ;;  %v766_v42 = vld [vmem:[%s2889_s3 + $0x68] sm:$0xff]  ;;  %v765_v43 = vld [vmem:[%s2889_s3 + $0x60] sm:$0xff] }
  0x5e   : > { %1950 = vmatprep.subr.mxu0 %v493_v11  ;;  %1991 = vmatpush3.msra.mxu1 %v629_v16  ;;  %v764_v44 = vld [vmem:[%s2889_s3 + $0x58] sm:$0xff]  ;;  %v763_v45 = vld [vmem:[%s2889_s3 + $0x50] sm:$0xff]  ;;  %v762_v46 = vld [vmem:[%s2889_s3 + $0x48] sm:$0xff] }
  0x5f   : > { %1951 = vmatpush3.msra.mxu0 %v493_v11  ;;  %1992 = vmatprep.subr.mxu1 %v628_v18  ;;  %v761_v47 = vld [vmem:[%s2889_s3 + $0x40] sm:$0xff]  ;;  %v760_v48 = vld [vmem:[%s2889_s3 + $0x38] sm:$0xff]  ;;  %v759_v49 = vld [vmem:[%s2889_s3 + $0x30] sm:$0xff] }
  0x60   : > { %1952 = vmatprep.subr.mxu0 %v492_v13  ;;  %1993 = vmatpush3.msra.mxu1 %v628_v18  ;;  %v758_v50 = vld [vmem:[%s2889_s3 + $0x28] sm:$0xff]  ;;  %v757_v51 = vld [vmem:[%s2889_s3 + $0x20] sm:$0xff]  ;;  %v755_v14 = vld [vmem:[%s2889_s3 + $0x10] sm:$0xff] }
  0x61   : > { %1953 = vmatpush3.msra.mxu0 %v492_v13  ;;  %1994 = vmatprep.subr.mxu1 %v627_v20  ;;  %v1734_v52 = vld [vmem:[%s2895_s9] ss:$0 sm:$0xff]  ;;  %v756_v13 = vld [vmem:[%s2889_s3 + $0x18] sm:$0xff]  ;;  %v901_v18 = vld [vmem:[#allocation2 + $0x70] sm:$0xff] }
  0x62   : > { %1954 = vmatprep.subr.mxu0 %v491_v15  ;;  %1995 = vmatpush3.msra.mxu1 %v627_v20  ;;  %v753_v16 = vld [vmem:[%s2889_s3] sm:$0xff] }
  0x63   : > { %1955 = vmatpush3.msra.mxu0 %v491_v15  ;;  %1996 = vmatprep.subr.mxu1 %v626_v22  ;;  %v754_v15 = vld [vmem:[%s2889_s3 + $0x8] sm:$0xff]  ;;  %v899_v20 = vld [vmem:[#allocation2 + $0x60] sm:$0xff] }
  0x64   : > { %1956 = vmatprep.subr.mxu0 %v490_v17  ;;  %1997 = vmatpush3.msra.mxu1 %v626_v22  ;;  %v897_v22 = vld [vmem:[#allocation2 + $0x50] sm:$0xff] }
  0x65   : > { %1957 = vmatpush3.msra.mxu0 %v490_v17  ;;  %1998 = vmatprep.subr.mxu1 %v625_v24  ;;  %v902_v17 = vld [vmem:[#allocation2 + $0x78] sm:$0xff] }
  0x66   : > { %1958 = vmatprep.subr.mxu0 %v489_v19  ;;  %1999 = vmatpush3.msra.mxu1 %v625_v24  ;;  %v895_v24 = vld [vmem:[#allocation2 + $0x40] sm:$0xff] }
  0x67   : > { %1959 = vmatpush3.msra.mxu0 %v489_v19  ;;  %2000 = vmatprep.subr.mxu1 %v624_v26  ;;  %v900_v19 = vld [vmem:[#allocation2 + $0x68] sm:$0xff] }
  0x68   : > { %1960 = vmatprep.subr.mxu0 %v488_v21  ;;  %2001 = vmatpush3.msra.mxu1 %v624_v26  ;;  %v893_v26 = vld [vmem:[#allocation2 + $0x30] sm:$0xff] }
  0x69   : > { %1961 = vmatpush3.msra.mxu0 %v488_v21  ;;  %2002 = vmatprep.subr.mxu1 %v623_v28  ;;  %v898_v21 = vld [vmem:[#allocation2 + $0x58] sm:$0xff] }
  0x6a   : > { %1962 = vmatprep.subr.mxu0 %v487_v23  ;;  %2003 = vmatpush3.msra.mxu1 %v623_v28  ;;  %v891_v28 = vld [vmem:[#allocation2 + $0x20] sm:$0xff] }
  0x6b   : > { %1963 = vmatpush3.msra.mxu0 %v487_v23  ;;  %2004 = vmatprep.subr.mxu1 %v622_v36  ;;  %v896_v23 = vld [vmem:[#allocation2 + $0x48] sm:$0xff] }
  0x6c   : > { %1964 = vmatprep.subr.mxu0 %v486_v25  ;;  %2005 = vmatpush3.msra.mxu1 %v622_v36 }
  0x6d   : > { %1965 = vmatpush3.msra.mxu0 %v486_v25  ;;  %2006 = vmatprep.subr.mxu1 %v621_v37  ;;  %v894_v25 = vld [vmem:[#allocation2 + $0x38] sm:$0xff] }
  0x6e   : > { %1966 = vmatprep.subr.mxu0 %v485_v27  ;;  %2007 = vmatpush3.msra.mxu1 %v621_v37 }
  0x6f   : > { %1967 = vmatpush3.msra.mxu0 %v485_v27  ;;  %2008 = vmatprep.subr.mxu1 %v620_v38  ;;  %v892_v27 = vld [vmem:[#allocation2 + $0x28] sm:$0xff] }
  0x70   : > { %1969 = vmatmul.mubr.f32.vlgmr.msra.gmra.mxu0 %v478_v29  ;;  %2009 = vmatpush3.msra.mxu1 %v620_v38  ;;  %v1735_v29 = vld [vmem:[%s2895_s9 + $0x1] ss:$0 sm:$0xff] }
  0x71   : > { %1971 = vmatprep.mubr.f32.mxu0 %v479_v30  ;;  %2010 = vmatprep.subr.mxu1 %v619_v39 }
  0x72   : > { %2011 = vmatpush3.msra.mxu1 %v619_v39  ;;  %2024 = vmatprep.subr.mxu0 %v768_v40 }
  0x73   : > { %2025 = vmatpush3.msra.mxu0 %v768_v40  ;;  %2068 = vmatprep.subr.mxu1 %v902_v17 }
  0x74   : > { %1972 = vmatmul.mubr.f32.gmra.mxu0 %v480_v31  ;;  %2026 = vmatprep.subr.mxu0 %v767_v41 }
  0x75   : > { %1974 = vmatprep.mubr.f32.mxu0 %v481_v32  ;;  %2027 = vmatpush3.msra.mxu0 %v767_v41 }
  0x76   : > { %2028 = vmatprep.subr.mxu0 %v766_v42 }
  0x77   : > { %2029 = vmatpush3.msra.mxu0 %v766_v42 }
  0x78   : > { %1975 = vmatmul.mubr.f32.gmra.mxu0 %v482_v33  ;;  %2030 = vmatprep.subr.mxu0 %v765_v43 }
  0x79   : > { %1977 = vmatprep.mubr.f32.mxu0 %v483_v34  ;;  %2031 = vmatpush3.msra.mxu0 %v765_v43 }
  0x7a   : > { %2032 = vmatprep.subr.mxu0 %v764_v44 }
  0x7b   : > { %2033 = vmatpush3.msra.mxu0 %v764_v44 }
  0x7c   : > { %1978 = vmatmul.mubr.f32.gmra.mxu0 %v484_v35  ;;  %2034 = vmatprep.subr.mxu0 %v763_v45 }
  0x7d   : > { %2035 = vmatpush3.msra.mxu0 %v763_v45 }
  0x7e   : > { %2036 = vmatprep.subr.mxu0 %v762_v46 }
  0x7f   : > { %2037 = vmatpush3.msra.mxu0 %v762_v46 }
  0x80   : > { %2038 = vmatprep.subr.mxu0 %v761_v47 }
  0x81   : > { %2039 = vmatpush3.msra.mxu0 %v761_v47 }
  0x82   : > { %2040 = vmatprep.subr.mxu0 %v760_v48 }
  0x83   : > { %2041 = vmatpush3.msra.mxu0 %v760_v48 }
  0x84   : > { %2042 = vmatprep.subr.mxu0 %v759_v49 }
  0x85   : > { %2043 = vmatpush3.msra.mxu0 %v759_v49 }
  0x86   : > { %2044 = vmatprep.subr.mxu0 %v758_v50 }
  0x87   : > { %2045 = vmatpush3.msra.mxu0 %v758_v50 }
  0x88   : > { %2046 = vmatprep.subr.mxu0 %v757_v51 }
  0x89   : > { %2047 = vmatpush3.msra.mxu0 %v757_v51 }
  0x8a   : > { %2048 = vmatprep.subr.mxu0 %v756_v13 }
  0x8b   : > { %2049 = vmatpush3.msra.mxu0 %v756_v13 }
  0x8c   : > { %2050 = vmatprep.subr.mxu0 %v755_v14 }
  0x8d   : > { %2051 = vmatpush3.msra.mxu0 %v755_v14 }
  0x8e   : > { %2052 = vmatprep.subr.mxu0 %v754_v15 }
  0x8f   : > { %2053 = vmatpush3.msra.mxu0 %v754_v15 }
  0x90   : > { %2054 = vmatprep.subr.mxu0 %v753_v16 }
  0x91   : > { %2055 = vmatpush3.msra.mxu0 %v753_v16 }
 0x130   : > { %v1970_v53 = vpop.f32.mrf.mxu0 }
 0x131   : > { %v578_v54 = vadd.f32 %v1970_v53, %v1734_v52 }
 0x132   : > { %v572_v55 = vpop.f32.mrf.mxu0 }
 0x133   : > { %v573_v56 = vadd.f32 %v1734_v52, %v572_v55  ;;  %v612_v59 = vmax.f32 %v578_v54, 0.0  ;;  %v890_v54 = vld [vmem:[#allocation2 + $0x18] sm:$0xff]  ;;  %v889_v55 = vld [vmem:[#allocation2 + $0x10] sm:$0xff] }
 0x134   : > { %v1973_v57 = vpop.f32.mrf.mxu0 }
 0x135   : > { %v611_v58 = vmax.f32 %v573_v56, 0.0  ;;  %v588_v60 = vadd.f32 %v1973_v57, %v1734_v52  ;;  %v888_v56 = vld [vmem:[#allocation2 + $0x8] sm:$0xff]  ;;  %v887_v57 = vld [vmem:[#allocation2] sm:$0xff] }
 0x136   : > { %v582_v61 = vpop.f32.mrf.mxu0 }
 0x137   : > { %v583_v62 = vadd.f32 %v1734_v52, %v582_v61  ;;  %2012 = vmatprep.mubr.f32.mxu1 %v611_v58  ;;  %v614_v1 = vmax.f32 %v588_v60, 0.0  ;;  %v1044_v58 = vld [vmem:[#allocation4 + $0x78] sm:$0xff]  ;;  %v1042_v60 = vld [vmem:[#allocation4 + $0x68] sm:$0xff]  ;;  %v1041_v61 = vld [vmem:[#allocation4 + $0x60] sm:$0xff] }
 0x138   : > { %v1976_v63 = vpop.f32.mrf.mxu0  ;;  %2013 = vmatmul.mubr.f32.vlgmr.msra.gmra.mxu1 %v612_v59  ;;  %v1043_v59 = vld [vmem:[#allocation4 + $0x70] sm:$0xff]  ;;  %2112 = vmatprep.subr.mxu0 %v1044_v58 }
 0x139   : > { %v613_v0 = vmax.f32 %v583_v62, 0.0  ;;  %v598_v2 = vadd.f32 %v1976_v63, %v1734_v52  ;;  %2069 = vmatpush3.msra.mxu1 %v902_v17  ;;  %v1040_v62 = vld [vmem:[#allocation4 + $0x58] sm:$0xff]  ;;  %v1039_v63 = vld [vmem:[#allocation4 + $0x50] sm:$0xff] }
 0x13a   : > { %v592_v3 = vpop.f32.mrf.mxu0  ;;  %2070 = vmatprep.subr.mxu1 %v901_v18 }
 0x13b   : > { %v593_v4 = vadd.f32 %v1734_v52, %v592_v3  ;;  %2015 = vmatprep.mubr.f32.mxu1 %v613_v0  ;;  %v616_v7 = vmax.f32 %v598_v2, 0.0  ;;  %2071 = vmatpush3.msra.mxu1 %v901_v18  ;;  %v1038_v0 = vld [vmem:[#allocation4 + $0x48] sm:$0xff]  ;;  %v1036_v2 = vld [vmem:[#allocation4 + $0x38] sm:$0xff]  ;;  %v1035_v3 = vld [vmem:[#allocation4 + $0x30] sm:$0xff] }
 0x13c   : > { %v1979_v5 = vpop.f32.mrf.mxu0  ;;  %2016 = vmatmul.mubr.f32.gmra.mxu1 %v614_v1  ;;  %2072 = vmatprep.subr.mxu1 %v900_v19  ;;  %v1037_v1 = vld [vmem:[#allocation4 + $0x40] sm:$0xff] }
 0x13d   : > { %v615_v6 = vmax.f32 %v593_v4, 0.0  ;;  %v608_v8 = vadd.f32 %v1979_v5, %v1734_v52  ;;  %2073 = vmatpush3.msra.mxu1 %v900_v19  ;;  %v1034_v4 = vld [vmem:[#allocation4 + $0x28] sm:$0xff]  ;;  %v1033_v5 = vld [vmem:[#allocation4 + $0x20] sm:$0xff] }
 0x13e   : > { %v602_v9 = vpop.f32.mrf.mxu0  ;;  %2074 = vmatprep.subr.mxu1 %v899_v20 }
 0x13f   : > { %v603_v10 = vadd.f32 %v1734_v52, %v602_v9  ;;  %2018 = vmatprep.mubr.f32.mxu1 %v615_v6  ;;  %v618_v12 = vmax.f32 %v608_v8, 0.0  ;;  %2075 = vmatpush3.msra.mxu1 %v899_v20  ;;  %v1736_v6 = vld [vmem:[%s2895_s9 + $0x2] ss:$0 sm:$0xff] }
 0x140   : > { %2019 = vmatmul.mubr.f32.gmra.mxu1 %v616_v7  ;;  %2076 = vmatprep.subr.mxu1 %v898_v21 }
 0x141   : > { %v617_v11 = vmax.f32 %v603_v10, 0.0  ;;  %2077 = vmatpush3.msra.mxu1 %v898_v21 }
 0x142   : > { %2078 = vmatprep.subr.mxu1 %v897_v22 }
 0x143   : > { %2021 = vmatprep.mubr.f32.mxu1 %v617_v11  ;;  %2079 = vmatpush3.msra.mxu1 %v897_v22 }
 0x144   : > { %2022 = vmatmul.mubr.f32.gmra.mxu1 %v618_v12  ;;  %2080 = vmatprep.subr.mxu1 %v896_v23 }
 0x145   : > { %2081 = vmatpush3.msra.mxu1 %v896_v23 }
 0x146   : > { %2082 = vmatprep.subr.mxu1 %v895_v24 }
 0x147   : > { %2083 = vmatpush3.msra.mxu1 %v895_v24 }
 0x148   : > { %2084 = vmatprep.subr.mxu1 %v894_v25 }
 0x149   : > { %2085 = vmatpush3.msra.mxu1 %v894_v25 }
 0x14a   : > { %2086 = vmatprep.subr.mxu1 %v893_v26 }
 0x14b   : > { %2087 = vmatpush3.msra.mxu1 %v893_v26 }
 0x14c   : > { %2088 = vmatprep.subr.mxu1 %v892_v27 }
 0x14d   : > { %2089 = vmatpush3.msra.mxu1 %v892_v27 }
 0x14e   : > { %2090 = vmatprep.subr.mxu1 %v891_v28 }
 0x14f   : > { %2091 = vmatpush3.msra.mxu1 %v891_v28 }
 0x150   : > { %2092 = vmatprep.subr.mxu1 %v890_v54 }
 0x151   : > { %2093 = vmatpush3.msra.mxu1 %v890_v54 }
 0x152   : > { %2094 = vmatprep.subr.mxu1 %v889_v55 }
 0x153   : > { %2095 = vmatpush3.msra.mxu1 %v889_v55 }
 0x154   : > { %2096 = vmatprep.subr.mxu1 %v888_v56 }
 0x155   : > { %2097 = vmatpush3.msra.mxu1 %v888_v56 }
 0x156   : > { %2098 = vmatprep.subr.mxu1 %v887_v57 }
 0x157   : > { %2099 = vmatpush3.msra.mxu1 %v887_v57 }
 0x1f8   : > { %v2014_v30 = vpop.f32.mrf.mxu1 }
 0x1f9   : > { %v712_v31 = vadd.f32 %v2014_v30, %v1735_v29 }
 0x1fa   : > { %v706_v32 = vpop.f32.mrf.mxu1 }
 0x1fb   : > { %v707_v33 = vadd.f32 %v1735_v29, %v706_v32  ;;  %v746_v36 = vmax.f32 %v712_v31, 0.0  ;;  %v1032_v31 = vld [vmem:[#allocation4 + $0x18] sm:$0xff]  ;;  %v1031_v32 = vld [vmem:[#allocation4 + $0x10] sm:$0xff] }
 0x1fc   : > { %v2017_v34 = vpop.f32.mrf.mxu1 }
 0x1fd   : > { %v745_v35 = vmax.f32 %v707_v33, 0.0  ;;  %v722_v37 = vadd.f32 %v2017_v34, %v1735_v29  ;;  %v1030_v33 = vld [vmem:[#allocation4 + $0x8] sm:$0xff]  ;;  %v1029_v34 = vld [vmem:[#allocation4] sm:$0xff] }
 0x1fe   : > { %v716_v38 = vpop.f32.mrf.mxu1 }
 0x1ff   : > { %v717_v39 = vadd.f32 %v1735_v29, %v716_v38  ;;  %2056 = vmatprep.mubr.f32.mxu0 %v745_v35  ;;  %v748_v42 = vmax.f32 %v722_v37, 0.0  ;;  %v1178_v35 = vld [vmem:[#allocation6 + $0x78] sm:$0xff]  ;;  %v1176_v37 = vld [vmem:[#allocation6 + $0x68] sm:$0xff]  ;;  %v1175_v38 = vld [vmem:[#allocation6 + $0x60] sm:$0xff] }
 0x200   : > { %v2020_v40 = vpop.f32.mrf.mxu1  ;;  %2057 = vmatmul.mubr.f32.vlgmr.msra.gmra.mxu0 %v746_v36  ;;  %v1177_v36 = vld [vmem:[#allocation6 + $0x70] sm:$0xff]  ;;  %2156 = vmatprep.subr.mxu1 %v1178_v35 }
 0x201   : > { %v747_v41 = vmax.f32 %v717_v39, 0.0  ;;  %v732_v43 = vadd.f32 %v2020_v40, %v1735_v29  ;;  %2113 = vmatpush3.msra.mxu0 %v1044_v58  ;;  %v1174_v39 = vld [vmem:[#allocation6 + $0x58] sm:$0xff]  ;;  %v1173_v40 = vld [vmem:[#allocation6 + $0x50] sm:$0xff] }
 0x202   : > { %v726_v44 = vpop.f32.mrf.mxu1  ;;  %2114 = vmatprep.subr.mxu0 %v1043_v59 }
 0x203   : > { %v727_v45 = vadd.f32 %v1735_v29, %v726_v44  ;;  %2059 = vmatprep.mubr.f32.mxu0 %v747_v41  ;;  %v750_v48 = vmax.f32 %v732_v43, 0.0  ;;  %2115 = vmatpush3.msra.mxu0 %v1043_v59  ;;  %v1172_v41 = vld [vmem:[#allocation6 + $0x48] sm:$0xff]  ;;  %v1170_v43 = vld [vmem:[#allocation6 + $0x38] sm:$0xff]  ;;  %v1169_v44 = vld [vmem:[#allocation6 + $0x30] sm:$0xff] }
 0x204   : > { %v2023_v46 = vpop.f32.mrf.mxu1  ;;  %2060 = vmatmul.mubr.f32.gmra.mxu0 %v748_v42  ;;  %2116 = vmatprep.subr.mxu0 %v1042_v60  ;;  %v1171_v42 = vld [vmem:[#allocation6 + $0x40] sm:$0xff] }
 0x205   : > { %v749_v47 = vmax.f32 %v727_v45, 0.0  ;;  %v742_v49 = vadd.f32 %v2023_v46, %v1735_v29  ;;  %2117 = vmatpush3.msra.mxu0 %v1042_v60  ;;  %v1168_v45 = vld [vmem:[#allocation6 + $0x28] sm:$0xff]  ;;  %v1167_v46 = vld [vmem:[#allocation6 + $0x20] sm:$0xff] }
 0x206   : > { %v736_v50 = vpop.f32.mrf.mxu1  ;;  %2118 = vmatprep.subr.mxu0 %v1041_v61 }
 0x207   : > { %v737_v51 = vadd.f32 %v1735_v29, %v736_v50  ;;  %2062 = vmatprep.mubr.f32.mxu0 %v749_v47  ;;  %v752_v53 = vmax.f32 %v742_v49, 0.0  ;;  %2119 = vmatpush3.msra.mxu0 %v1041_v61  ;;  %v1737_v47 = vld [vmem:[%s2895_s9 + $0x3] ss:$0 sm:$0xff] }
 0x208   : > { %2063 = vmatmul.mubr.f32.gmra.mxu0 %v750_v48  ;;  %2120 = vmatprep.subr.mxu0 %v1040_v62 }
 0x209   : > { %v751_v52 = vmax.f32 %v737_v51, 0.0  ;;  %2121 = vmatpush3.msra.mxu0 %v1040_v62 }
 0x20a   : > { %2122 = vmatprep.subr.mxu0 %v1039_v63 }
 0x20b   : > { %2065 = vmatprep.mubr.f32.mxu0 %v751_v52  ;;  %2123 = vmatpush3.msra.mxu0 %v1039_v63 }
 0x20c   : > { %2066 = vmatmul.mubr.f32.gmra.mxu0 %v752_v53  ;;  %2124 = vmatprep.subr.mxu0 %v1038_v0 }
 0x20d   : > { %2125 = vmatpush3.msra.mxu0 %v1038_v0 }
 0x20e   : > { %2126 = vmatprep.subr.mxu0 %v1037_v1 }
 0x20f   : > { %2127 = vmatpush3.msra.mxu0 %v1037_v1 }
 0x210   : > { %2128 = vmatprep.subr.mxu0 %v1036_v2 }
 0x211   : > { %2129 = vmatpush3.msra.mxu0 %v1036_v2 }
 0x212   : > { %2130 = vmatprep.subr.mxu0 %v1035_v3 }
 0x213   : > { %2131 = vmatpush3.msra.mxu0 %v1035_v3 }
 0x214   : > { %2132 = vmatprep.subr.mxu0 %v1034_v4 }
 0x215   : > { %2133 = vmatpush3.msra.mxu0 %v1034_v4 }
 0x216   : > { %2134 = vmatprep.subr.mxu0 %v1033_v5 }
 0x217   : > { %2135 = vmatpush3.msra.mxu0 %v1033_v5 }
 0x218   : > { %2136 = vmatprep.subr.mxu0 %v1032_v31 }
 0x219   : > { %2137 = vmatpush3.msra.mxu0 %v1032_v31 }
 0x21a   : > { %2138 = vmatprep.subr.mxu0 %v1031_v32 }
 0x21b   : > { %2139 = vmatpush3.msra.mxu0 %v1031_v32 }
 0x21c   : > { %2140 = vmatprep.subr.mxu0 %v1030_v33 }
 0x21d   : > { %2141 = vmatpush3.msra.mxu0 %v1030_v33 }
 0x21e   : > { %2142 = vmatprep.subr.mxu0 %v1029_v34 }
 0x21f   : > { %2143 = vmatpush3.msra.mxu0 %v1029_v34 }
 0x2c0   : > { %v2058_v7 = vpop.f32.mrf.mxu0 }
 0x2c1   : > { %v846_v8 = vadd.f32 %v2058_v7, %v1736_v6 }
 0x2c2   : > { %v840_v9 = vpop.f32.mrf.mxu0 }
 0x2c3   : > { %v841_v10 = vadd.f32 %v1736_v6, %v840_v9  ;;  %v880_v13 = vmax.f32 %v846_v8, 0.0  ;;  %v1166_v8 = vld [vmem:[#allocation6 + $0x18] sm:$0xff]  ;;  %v1165_v9 = vld [vmem:[#allocation6 + $0x10] sm:$0xff] }
 0x2c4   : > { %v2061_v11 = vpop.f32.mrf.mxu0 }
 0x2c5   : > { %v879_v12 = vmax.f32 %v841_v10, 0.0  ;;  %v856_v14 = vadd.f32 %v2061_v11, %v1736_v6  ;;  %v1164_v10 = vld [vmem:[#allocation6 + $0x8] sm:$0xff]  ;;  %v1163_v11 = vld [vmem:[#allocation6] sm:$0xff] }
 0x2c6   : > { %v850_v15 = vpop.f32.mrf.mxu0 }
 0x2c7   : > { %v851_v16 = vadd.f32 %v1736_v6, %v850_v15  ;;  %2100 = vmatprep.mubr.f32.mxu1 %v879_v12  ;;  %v882_v19 = vmax.f32 %v856_v14, 0.0  ;;  %v1312_v12 = vld [vmem:[#allocation7 + $0x78] sm:$0xff]  ;;  %v1310_v14 = vld [vmem:[#allocation7 + $0x68] sm:$0xff]  ;;  %v1309_v15 = vld [vmem:[#allocation7 + $0x60] sm:$0xff] }
 0x2c8   : > { %v2064_v17 = vpop.f32.mrf.mxu0  ;;  %2101 = vmatmul.mubr.f32.vlgmr.msra.gmra.mxu1 %v880_v13  ;;  %v1311_v13 = vld [vmem:[#allocation7 + $0x70] sm:$0xff]  ;;  %2200 = vmatprep.subr.mxu0 %v1312_v12 }
 0x2c9   : > { %v881_v18 = vmax.f32 %v851_v16, 0.0  ;;  %v866_v20 = vadd.f32 %v2064_v17, %v1736_v6  ;;  %2157 = vmatpush3.msra.mxu1 %v1178_v35  ;;  %v1308_v16 = vld [vmem:[#allocation7 + $0x58] sm:$0xff]  ;;  %v1307_v17 = vld [vmem:[#allocation7 + $0x50] sm:$0xff] }
 0x2ca   : > { %v860_v21 = vpop.f32.mrf.mxu0  ;;  %2158 = vmatprep.subr.mxu1 %v1177_v36 }
 0x2cb   : > { %v861_v22 = vadd.f32 %v1736_v6, %v860_v21  ;;  %2103 = vmatprep.mubr.f32.mxu1 %v881_v18  ;;  %v884_v25 = vmax.f32 %v866_v20, 0.0  ;;  %2159 = vmatpush3.msra.mxu1 %v1177_v36  ;;  %v1306_v18 = vld [vmem:[#allocation7 + $0x48] sm:$0xff]  ;;  %v1304_v20 = vld [vmem:[#allocation7 + $0x38] sm:$0xff]  ;;  %v1303_v21 = vld [vmem:[#allocation7 + $0x30] sm:$0xff] }
 0x2cc   : > { %v2067_v23 = vpop.f32.mrf.mxu0  ;;  %2104 = vmatmul.mubr.f32.gmra.mxu1 %v882_v19  ;;  %2160 = vmatprep.subr.mxu1 %v1176_v37  ;;  %v1305_v19 = vld [vmem:[#allocation7 + $0x40] sm:$0xff] }
 0x2cd   : > { %v883_v24 = vmax.f32 %v861_v22, 0.0  ;;  %v876_v26 = vadd.f32 %v2067_v23, %v1736_v6  ;;  %2161 = vmatpush3.msra.mxu1 %v1176_v37  ;;  %v1302_v22 = vld [vmem:[#allocation7 + $0x28] sm:$0xff]  ;;  %v1301_v23 = vld [vmem:[#allocation7 + $0x20] sm:$0xff] }
 0x2ce   : > { %v870_v27 = vpop.f32.mrf.mxu0  ;;  %2162 = vmatprep.subr.mxu1 %v1175_v38 }
 0x2cf   : > { %v871_v28 = vadd.f32 %v1736_v6, %v870_v27  ;;  %2106 = vmatprep.mubr.f32.mxu1 %v883_v24  ;;  %v886_v30 = vmax.f32 %v876_v26, 0.0  ;;  %2163 = vmatpush3.msra.mxu1 %v1175_v38  ;;  %v1738_v24 = vld [vmem:[%s2895_s9 + $0x4] ss:$0 sm:$0xff] }
 0x2d0   : > { %2107 = vmatmul.mubr.f32.gmra.mxu1 %v884_v25  ;;  %2164 = vmatprep.subr.mxu1 %v1174_v39 }
 0x2d1   : > { %v885_v29 = vmax.f32 %v871_v28, 0.0  ;;  %2165 = vmatpush3.msra.mxu1 %v1174_v39 }
 0x2d2   : > { %2166 = vmatprep.subr.mxu1 %v1173_v40 }
 0x2d3   : > { %2109 = vmatprep.mubr.f32.mxu1 %v885_v29  ;;  %2167 = vmatpush3.msra.mxu1 %v1173_v40 }
 0x2d4   : > { %2110 = vmatmul.mubr.f32.gmra.mxu1 %v886_v30  ;;  %2168 = vmatprep.subr.mxu1 %v1172_v41 }
 0x2d5   : > { %2169 = vmatpush3.msra.mxu1 %v1172_v41 }
 0x2d6   : > { %2170 = vmatprep.subr.mxu1 %v1171_v42 }
 0x2d7   : > { %2171 = vmatpush3.msra.mxu1 %v1171_v42 }
 0x2d8   : > { %2172 = vmatprep.subr.mxu1 %v1170_v43 }
 0x2d9   : > { %2173 = vmatpush3.msra.mxu1 %v1170_v43 }
 0x2da   : > { %2174 = vmatprep.subr.mxu1 %v1169_v44 }
 0x2db   : > { %2175 = vmatpush3.msra.mxu1 %v1169_v44 }
 0x2dc   : > { %2176 = vmatprep.subr.mxu1 %v1168_v45 }
 0x2dd   : > { %2177 = vmatpush3.msra.mxu1 %v1168_v45 }
 0x2de   : > { %2178 = vmatprep.subr.mxu1 %v1167_v46 }
 0x2df   : > { %2179 = vmatpush3.msra.mxu1 %v1167_v46 }
 0x2e0   : > { %2180 = vmatprep.subr.mxu1 %v1166_v8 }
 0x2e1   : > { %2181 = vmatpush3.msra.mxu1 %v1166_v8 }
 0x2e2   : > { %2182 = vmatprep.subr.mxu1 %v1165_v9 }
 0x2e3   : > { %2183 = vmatpush3.msra.mxu1 %v1165_v9 }
 0x2e4   : > { %2184 = vmatprep.subr.mxu1 %v1164_v10 }
 0x2e5   : > { %2185 = vmatpush3.msra.mxu1 %v1164_v10 }
 0x2e6   : > { %2186 = vmatprep.subr.mxu1 %v1163_v11 }
 0x2e7   : > { %2187 = vmatpush3.msra.mxu1 %v1163_v11 }
 0x388   : > { %v2102_v48 = vpop.f32.mrf.mxu1 }
 0x389   : > { %v980_v49 = vadd.f32 %v2102_v48, %v1737_v47 }
 0x38a   : > { %v974_v50 = vpop.f32.mrf.mxu1 }
 0x38b   : > { %v1014_v51 = vmax.f32 %v980_v49, 0.0  ;;  %v975_v52 = vadd.f32 %v1737_v47, %v974_v50  ;;  %v1300_v49 = vld [vmem:[#allocation7 + $0x18] sm:$0xff]  ;;  %v1299_v50 = vld [vmem:[#allocation7 + $0x10] sm:$0xff] }
 0x38c   : > { %v2105_v53 = vpop.f32.mrf.mxu1 }
 0x38d   : > { %1022 = vst [vmem:[%s2857_s16 + $0x8] sm:$0xff] %v1014_v51  ;;  %v1013_v54 = vmax.f32 %v975_v52, 0.0  ;;  %v990_v55 = vadd.f32 %v2105_v53, %v1737_v47  ;;  %v1297_v52 = vld [vmem:[#allocation7] sm:$0xff]  ;;  %v1446_v53 = vld [vmem:[#allocation9 + $0x78] sm:$0xff] }
 0x38e   : > { %v984_v56 = vpop.f32.mrf.mxu1  ;;  %2244 = vmatprep.subr.mxu1 %v1446_v53 }
 0x38f   : > { %1021 = vst [vmem:[%s2857_s16] sm:$0xff] %v1013_v54  ;;  %v1016_v57 = vmax.f32 %v990_v55, 0.0  ;;  %v985_v58 = vadd.f32 %v1737_v47, %v984_v56  ;;  %2144 = vmatprep.mubr.f32.mxu0 %v1013_v54  ;;  %v1445_v54 = vld [vmem:[#allocation9 + $0x70] sm:$0xff]  ;;  %v1444_v55 = vld [vmem:[#allocation9 + $0x68] sm:$0xff]  ;;  %v1443_v56 = vld [vmem:[#allocation9 + $0x60] sm:$0xff] }
 0x390   : > { %v2108_v59 = vpop.f32.mrf.mxu1  ;;  %2145 = vmatmul.mubr.f32.vlgmr.msra.gmra.mxu0 %v1014_v51  ;;  %v1298_v51 = vld [vmem:[#allocation7 + $0x8] sm:$0xff] }
 0x391   : > { %1024 = vst [vmem:[%s2857_s16 + $0x18] sm:$0xff] %v1016_v57  ;;  %v1015_v60 = vmax.f32 %v985_v58, 0.0  ;;  %v1000_v61 = vadd.f32 %v2108_v59, %v1737_v47  ;;  %2201 = vmatpush3.msra.mxu0 %v1312_v12  ;;  %v1441_v58 = vld [vmem:[#allocation9 + $0x50] sm:$0xff]  ;;  %v1440_v59 = vld [vmem:[#allocation9 + $0x48] sm:$0xff] }
 0x392   : > { %v994_v62 = vpop.f32.mrf.mxu1  ;;  %2202 = vmatprep.subr.mxu0 %v1311_v13 }
 0x393   : > { %1023 = vst [vmem:[%s2857_s16 + $0x10] sm:$0xff] %v1015_v60  ;;  %v1018_v63 = vmax.f32 %v1000_v61, 0.0  ;;  %v995_v0 = vadd.f32 %v1737_v47, %v994_v62  ;;  %2147 = vmatprep.mubr.f32.mxu0 %v1015_v60  ;;  %2203 = vmatpush3.msra.mxu0 %v1311_v13  ;;  %v1439_v60 = vld [vmem:[#allocation9 + $0x40] sm:$0xff]  ;;  %v1438_v61 = vld [vmem:[#allocation9 + $0x38] sm:$0xff]  ;;  %v1437_v62 = vld [vmem:[#allocation9 + $0x30] sm:$0xff] }
 0x394   : > { %v2111_v1 = vpop.f32.mrf.mxu1  ;;  %2148 = vmatmul.mubr.f32.gmra.mxu0 %v1016_v57  ;;  %2204 = vmatprep.subr.mxu0 %v1310_v14  ;;  %v1442_v57 = vld [vmem:[#allocation9 + $0x58] sm:$0xff] }
 0x395   : > { %1026 = vst [vmem:[%s2857_s16 + $0x28] sm:$0xff] %v1018_v63  ;;  %v1017_v2 = vmax.f32 %v995_v0, 0.0  ;;  %v1010_v3 = vadd.f32 %v2111_v1, %v1737_v47  ;;  %2205 = vmatpush3.msra.mxu0 %v1310_v14  ;;  %v1435_v0 = vld [vmem:[#allocation9 + $0x20] sm:$0xff] }
 0x396   : > { %v1004_v4 = vpop.f32.mrf.mxu1  ;;  %2206 = vmatprep.subr.mxu0 %v1309_v15  ;;  %v1739_v1 = vld [vmem:[%s2895_s9 + $0x5] ss:$0 sm:$0xff] }
 0x397   : > { %1025 = vst [vmem:[%s2857_s16 + $0x20] sm:$0xff] %v1017_v2  ;;  %v1020_v5 = vmax.f32 %v1010_v3, 0.0  ;;  %v1005_v6 = vadd.f32 %v1737_v47, %v1004_v4  ;;  %2150 = vmatprep.mubr.f32.mxu0 %v1017_v2  ;;  %2207 = vmatpush3.msra.mxu0 %v1309_v15 }
 0x398   : > { %2151 = vmatmul.mubr.f32.gmra.mxu0 %v1018_v63  ;;  %2208 = vmatprep.subr.mxu0 %v1308_v16  ;;  %v1436_v63 = vld [vmem:[#allocation9 + $0x28] sm:$0xff] }
 0x399   : > { %1028 = vst [vmem:[%s2857_s16 + $0x38] sm:$0xff] %v1020_v5  ;;  %v1019_v7 = vmax.f32 %v1005_v6, 0.0  ;;  %2209 = vmatpush3.msra.mxu0 %v1308_v16 }
 0x39a   : > { %2210 = vmatprep.subr.mxu0 %v1307_v17 }
 0x39b   : > { %1027 = vst [vmem:[%s2857_s16 + $0x30] sm:$0xff] %v1019_v7  ;;  %2153 = vmatprep.mubr.f32.mxu0 %v1019_v7  ;;  %2211 = vmatpush3.msra.mxu0 %v1307_v17 }
 0x39c   : > { %2154 = vmatmul.mubr.f32.gmra.mxu0 %v1020_v5  ;;  %2212 = vmatprep.subr.mxu0 %v1306_v18 }
 0x39d   : > { %2213 = vmatpush3.msra.mxu0 %v1306_v18 }
 0x39e   : > { %2214 = vmatprep.subr.mxu0 %v1305_v19 }
 0x39f   : > { %2215 = vmatpush3.msra.mxu0 %v1305_v19 }
 0x3a0   : > { %2216 = vmatprep.subr.mxu0 %v1304_v20 }
 0x3a1   : > { %2217 = vmatpush3.msra.mxu0 %v1304_v20 }
 0x3a2   : > { %2218 = vmatprep.subr.mxu0 %v1303_v21 }
 0x3a3   : > { %2219 = vmatpush3.msra.mxu0 %v1303_v21 }
 0x3a4   : > { %2220 = vmatprep.subr.mxu0 %v1302_v22 }
 0x3a5   : > { %2221 = vmatpush3.msra.mxu0 %v1302_v22 }
 0x3a6   : > { %2222 = vmatprep.subr.mxu0 %v1301_v23 }
 0x3a7   : > { %2223 = vmatpush3.msra.mxu0 %v1301_v23 }
 0x3a8   : > { %2224 = vmatprep.subr.mxu0 %v1300_v49 }
 0x3a9   : > { %2225 = vmatpush3.msra.mxu0 %v1300_v49 }
 0x3aa   : > { %2226 = vmatprep.subr.mxu0 %v1299_v50 }
 0x3ab   : > { %2227 = vmatpush3.msra.mxu0 %v1299_v50 }
 0x3ac   : > { %2228 = vmatprep.subr.mxu0 %v1298_v51 }
 0x3ad   : > { %2229 = vmatpush3.msra.mxu0 %v1298_v51 }
 0x3ae   : > { %2230 = vmatprep.subr.mxu0 %v1297_v52 }
 0x3af   : > { %2231 = vmatpush3.msra.mxu0 %v1297_v52 }
 0x450   : > { %v2146_v25 = vpop.f32.mrf.mxu0 }
 0x451   : > { %v1122_v26 = vadd.f32 %v2146_v25, %v1738_v24 }
 0x452   : > { %v1116_v27 = vpop.f32.mrf.mxu0 }
 0x453   : > { %v1117_v28 = vadd.f32 %v1738_v24, %v1116_v27  ;;  %v1156_v31 = vmax.f32 %v1122_v26, 0.0  ;;  %v1434_v26 = vld [vmem:[#allocation9 + $0x18] sm:$0xff]  ;;  %v1433_v27 = vld [vmem:[#allocation9 + $0x10] sm:$0xff] }
 0x454   : > { %v2149_v29 = vpop.f32.mrf.mxu0 }
 0x455   : > { %v1155_v30 = vmax.f32 %v1117_v28, 0.0  ;;  %v1132_v32 = vadd.f32 %v2149_v29, %v1738_v24  ;;  %v1432_v28 = vld [vmem:[#allocation9 + $0x8] sm:$0xff]  ;;  %v1431_v29 = vld [vmem:[#allocation9] sm:$0xff] }
 0x456   : > { %v1126_v33 = vpop.f32.mrf.mxu0 }
 0x457   : > { %v1127_v34 = vadd.f32 %v1738_v24, %v1126_v33  ;;  %2188 = vmatprep.mubr.f32.mxu1 %v1155_v30  ;;  %v1158_v37 = vmax.f32 %v1132_v32, 0.0  ;;  %v1740_v30 = vld [vmem:[%s2895_s9 + $0x6] ss:$0 sm:$0xff] }
 0x458   : > { %v2152_v35 = vpop.f32.mrf.mxu0  ;;  %2189 = vmatmul.mubr.f32.vlgmr.msra.gmra.mxu1 %v1156_v31 }
 0x459   : > { %v1157_v36 = vmax.f32 %v1127_v34, 0.0  ;;  %v1142_v38 = vadd.f32 %v2152_v35, %v1738_v24  ;;  %2245 = vmatpush3.msra.mxu1 %v1446_v53 }
 0x45a   : > { %v1136_v39 = vpop.f32.mrf.mxu0  ;;  %2246 = vmatprep.subr.mxu1 %v1445_v54 }
 0x45b   : > { %v1137_v40 = vadd.f32 %v1738_v24, %v1136_v39  ;;  %2191 = vmatprep.mubr.f32.mxu1 %v1157_v36  ;;  %v1160_v43 = vmax.f32 %v1142_v38, 0.0  ;;  %2247 = vmatpush3.msra.mxu1 %v1445_v54 }
 0x45c   : > { %v2155_v41 = vpop.f32.mrf.mxu0  ;;  %2192 = vmatmul.mubr.f32.gmra.mxu1 %v1158_v37  ;;  %2248 = vmatprep.subr.mxu1 %v1444_v55 }
 0x45d   : > { %v1159_v42 = vmax.f32 %v1137_v40, 0.0  ;;  %v1152_v44 = vadd.f32 %v2155_v41, %v1738_v24  ;;  %2249 = vmatpush3.msra.mxu1 %v1444_v55  ;;  %v1741_v55 = vld [vmem:[%s2895_s9 + $0x7] ss:$0 sm:$0xff] }
 0x45e   : > { %v1146_v45 = vpop.f32.mrf.mxu0  ;;  %2250 = vmatprep.subr.mxu1 %v1443_v56 }
 0x45f   : > { %v1147_v46 = vadd.f32 %v1738_v24, %v1146_v45  ;;  %2194 = vmatprep.mubr.f32.mxu1 %v1159_v42  ;;  %v1162_v48 = vmax.f32 %v1152_v44, 0.0  ;;  %2251 = vmatpush3.msra.mxu1 %v1443_v56 }
 0x460   : > { %2195 = vmatmul.mubr.f32.gmra.mxu1 %v1160_v43  ;;  %2252 = vmatprep.subr.mxu1 %v1442_v57 }
 0x461   : > { %v1161_v47 = vmax.f32 %v1147_v46, 0.0  ;;  %2253 = vmatpush3.msra.mxu1 %v1442_v57 }
 0x462   : > { %2254 = vmatprep.subr.mxu1 %v1441_v58 }
 0x463   : > { %2197 = vmatprep.mubr.f32.mxu1 %v1161_v47  ;;  %2255 = vmatpush3.msra.mxu1 %v1441_v58 }
 0x464   : > { %2198 = vmatmul.mubr.f32.gmra.mxu1 %v1162_v48  ;;  %2256 = vmatprep.subr.mxu1 %v1440_v59 }
 0x465   : > { %2257 = vmatpush3.msra.mxu1 %v1440_v59 }
 0x466   : > { %2258 = vmatprep.subr.mxu1 %v1439_v60 }
 0x467   : > { %2259 = vmatpush3.msra.mxu1 %v1439_v60 }
 0x468   : > { %2260 = vmatprep.subr.mxu1 %v1438_v61 }
 0x469   : > { %2261 = vmatpush3.msra.mxu1 %v1438_v61 }
 0x46a   : > { %2262 = vmatprep.subr.mxu1 %v1437_v62 }
 0x46b   : > { %2263 = vmatpush3.msra.mxu1 %v1437_v62 }
 0x46c   : > { %2264 = vmatprep.subr.mxu1 %v1436_v63 }
 0x46d   : > { %2265 = vmatpush3.msra.mxu1 %v1436_v63 }
 0x46e   : > { %2266 = vmatprep.subr.mxu1 %v1435_v0 }
 0x46f   : > { %2267 = vmatpush3.msra.mxu1 %v1435_v0 }
 0x470   : > { %2268 = vmatprep.subr.mxu1 %v1434_v26 }
 0x471   : > { %2269 = vmatpush3.msra.mxu1 %v1434_v26 }
 0x472   : > { %2270 = vmatprep.subr.mxu1 %v1433_v27 }
 0x473   : > { %2271 = vmatpush3.msra.mxu1 %v1433_v27 }
 0x474   : > { %2272 = vmatprep.subr.mxu1 %v1432_v28 }
 0x475   : > { %2273 = vmatpush3.msra.mxu1 %v1432_v28 }
 0x476   : > { %2274 = vmatprep.subr.mxu1 %v1431_v29 }
 0x477   : > { %2275 = vmatpush3.msra.mxu1 %v1431_v29 }
 0x518   : > { %v2190_v2 = vpop.f32.mrf.mxu1 }
 0x519   : > { %v1256_v3 = vadd.f32 %v2190_v2, %v1739_v1 }
 0x51a   : > { %v1250_v4 = vpop.f32.mrf.mxu1 }
 0x51b   : > { %v1251_v5 = vadd.f32 %v1739_v1, %v1250_v4  ;;  %v1290_v8 = vmax.f32 %v1256_v3, 0.0 }
 0x51c   : > { %v2193_v6 = vpop.f32.mrf.mxu1 }
 0x51d   : > { %v1289_v7 = vmax.f32 %v1251_v5, 0.0  ;;  %v1266_v9 = vadd.f32 %v2193_v6, %v1739_v1 }
 0x51e   : > { %v1260_v10 = vpop.f32.mrf.mxu1 }
 0x51f   : > { %v1261_v11 = vadd.f32 %v1739_v1, %v1260_v10  ;;  %2232 = vmatprep.mubr.f32.mxu0 %v1289_v7  ;;  %v1292_v14 = vmax.f32 %v1266_v9, 0.0 }
 0x520   : > { %v2196_v12 = vpop.f32.mrf.mxu1  ;;  %2233 = vmatmul.mubr.f32.vlgmr.msra.gmra.mxu0 %v1290_v8 }
 0x521   : > { %v1291_v13 = vmax.f32 %v1261_v11, 0.0  ;;  %v1276_v15 = vadd.f32 %v2196_v12, %v1739_v1 }
 0x522   : > { %v1270_v16 = vpop.f32.mrf.mxu1 }
 0x523   : > { %v1271_v17 = vadd.f32 %v1739_v1, %v1270_v16  ;;  %2235 = vmatprep.mubr.f32.mxu0 %v1291_v13  ;;  %v1294_v20 = vmax.f32 %v1276_v15, 0.0 }
 0x524   : > { %v2199_v18 = vpop.f32.mrf.mxu1  ;;  %2236 = vmatmul.mubr.f32.gmra.mxu0 %v1292_v14 }
 0x525   : > { %v1293_v19 = vmax.f32 %v1271_v17, 0.0  ;;  %v1286_v21 = vadd.f32 %v2199_v18, %v1739_v1 }
 0x526   : > { %v1280_v22 = vpop.f32.mrf.mxu1 }
 0x527   : > { %v1281_v23 = vadd.f32 %v1739_v1, %v1280_v22  ;;  %2238 = vmatprep.mubr.f32.mxu0 %v1293_v19  ;;  %v1296_v25 = vmax.f32 %v1286_v21, 0.0 }
 0x528   : > { %2239 = vmatmul.mubr.f32.gmra.mxu0 %v1294_v20 }
 0x529   : > { %v1295_v24 = vmax.f32 %v1281_v23, 0.0 }
 0x52b   : > { %2241 = vmatprep.mubr.f32.mxu0 %v1295_v24 }
 0x52c   : > { %2242 = vmatmul.mubr.f32.gmra.mxu0 %v1296_v25 }
 0x5e0   : > { %v2234_v31 = vpop.f32.mrf.mxu0 }
 0x5e1   : > { %v1390_v32 = vadd.f32 %v2234_v31, %v1740_v30 }
 0x5e2   : > { %v1384_v33 = vpop.f32.mrf.mxu0 }
 0x5e3   : > { %v1385_v34 = vadd.f32 %v1740_v30, %v1384_v33  ;;  %v1424_v37 = vmax.f32 %v1390_v32, 0.0 }
 0x5e4   : > { %v2237_v35 = vpop.f32.mrf.mxu0 }
 0x5e5   : > { %v1423_v36 = vmax.f32 %v1385_v34, 0.0  ;;  %v1400_v38 = vadd.f32 %v2237_v35, %v1740_v30 }
 0x5e6   : > { %v1394_v39 = vpop.f32.mrf.mxu0 }
 0x5e7   : > { %v1395_v40 = vadd.f32 %v1740_v30, %v1394_v39  ;;  %2276 = vmatprep.mubr.f32.mxu1 %v1423_v36  ;;  %v1426_v43 = vmax.f32 %v1400_v38, 0.0 }
 0x5e8   : > { %v2240_v41 = vpop.f32.mrf.mxu0  ;;  %2277 = vmatmul.mubr.f32.vlgmr.msra.gmra.mxu1 %v1424_v37 }
 0x5e9   : > { %v1425_v42 = vmax.f32 %v1395_v40, 0.0  ;;  %v1410_v44 = vadd.f32 %v2240_v41, %v1740_v30 }
 0x5ea   : > { %v1404_v45 = vpop.f32.mrf.mxu0 }
 0x5eb   : > { %v1405_v46 = vadd.f32 %v1740_v30, %v1404_v45  ;;  %2279 = vmatprep.mubr.f32.mxu1 %v1425_v42  ;;  %v1428_v49 = vmax.f32 %v1410_v44, 0.0 }
 0x5ec   : > { %v2243_v47 = vpop.f32.mrf.mxu0  ;;  %2280 = vmatmul.mubr.f32.gmra.mxu1 %v1426_v43 }
 0x5ed   : > { %v1427_v48 = vmax.f32 %v1405_v46, 0.0  ;;  %v1420_v50 = vadd.f32 %v2243_v47, %v1740_v30 }
 0x5ee   : > { %v1414_v51 = vpop.f32.mrf.mxu0 }
 0x5ef   : > { %v1415_v52 = vadd.f32 %v1740_v30, %v1414_v51  ;;  %2282 = vmatprep.mubr.f32.mxu1 %v1427_v48  ;;  %v1430_v54 = vmax.f32 %v1420_v50, 0.0 }
 0x5f0   : > { %2283 = vmatmul.mubr.f32.gmra.mxu1 %v1428_v49 }
 0x5f1   : > { %v1429_v53 = vmax.f32 %v1415_v52, 0.0 }
 0x5f3   : > { %2285 = vmatprep.mubr.f32.mxu1 %v1429_v53 }
 0x5f4   : > { %2286 = vmatmul.mubr.f32.gmra.mxu1 %v1430_v54 }
 0x6a8   : > { %v2278_v56 = vpop.f32.mrf.mxu1 }
 0x6a9   : > { %v1524_v57 = vadd.f32 %v2278_v56, %v1741_v55 }
 0x6aa   : > { %v1518_v58 = vpop.f32.mrf.mxu1 }
 0x6ab   : > { %v1558_v59 = vmax.f32 %v1524_v57, 0.0  ;;  %v1519_v60 = vadd.f32 %v1741_v55, %v1518_v58 }
 0x6ac   : > { %v2281_v61 = vpop.f32.mrf.mxu1 }
 0x6ad   : > { %1566 = vst [vmem:[%s475_s22 + $0x8] sm:$0xff] %v1558_v59  ;;  %v1557_v62 = vmax.f32 %v1519_v60, 0.0  ;;  %v1534_v63 = vadd.f32 %v2281_v61, %v1741_v55 }
 0x6ae   : > { %v1528_v0 = vpop.f32.mrf.mxu1 }
 0x6af   : > { %1565 = vst [vmem:[%s475_s22] sm:$0xff] %v1557_v62  ;;  %v1560_v1 = vmax.f32 %v1534_v63, 0.0  ;;  %v1529_v2 = vadd.f32 %v1741_v55, %v1528_v0 }
 0x6b0   : > { %v2284_v3 = vpop.f32.mrf.mxu1 }
 0x6b1   : > { %1568 = vst [vmem:[%s475_s22 + $0x18] sm:$0xff] %v1560_v1  ;;  %v1559_v4 = vmax.f32 %v1529_v2, 0.0  ;;  %v1544_v5 = vadd.f32 %v2284_v3, %v1741_v55 }
 0x6b2   : > { %v1538_v6 = vpop.f32.mrf.mxu1 }
 0x6b3   : > { %1567 = vst [vmem:[%s475_s22 + $0x10] sm:$0xff] %v1559_v4  ;;  %v1562_v7 = vmax.f32 %v1544_v5, 0.0  ;;  %v1539_v8 = vadd.f32 %v1741_v55, %v1538_v6 }
 0x6b4   : > { %v2287_v9 = vpop.f32.mrf.mxu1 }
 0x6b5   : > { %1570 = vst [vmem:[%s475_s22 + $0x28] sm:$0xff] %v1562_v7  ;;  %v1561_v10 = vmax.f32 %v1539_v8, 0.0  ;;  %v1554_v11 = vadd.f32 %v2287_v9, %v1741_v55 }
 0x6b6   : > { %v1548_v12 = vpop.f32.mrf.mxu1 }
 0x6b7   : > { %1569 = vst [vmem:[%s475_s22 + $0x20] sm:$0xff] %v1561_v10  ;;  %v1564_v13 = vmax.f32 %v1554_v11, 0.0  ;;  %v1549_v14 = vadd.f32 %v1741_v55, %v1548_v12 }
 0x6b9   : > { %1572 = vst [vmem:[%s475_s22 + $0x38] sm:$0xff] %v1564_v13  ;;  %v1563_v15 = vmax.f32 %v1549_v14, 0.0 }
 0x6bb   : > { %1571 = vst [vmem:[%s475_s22 + $0x30] sm:$0xff] %v1563_v15 }
 0x6bc PF: > { %s25_s17 = sadd.s32 1, %s2497_s17  }
 0x6bd   : > { %p22_p2 = scmp.ge.s32.totalorder %s25_s17, 4  }
 0x6bf   :  { %24 = sbr.rel (!%p22_p2) target bundleno = 3 (0x3), region = 123 }
 0x6c4   :  { %1612 = vsyncpa [#allocation3], 1 }
 0x6c5   :  { %1614 = vsyncpa [#allocation3 + $0x1], 1 }
 0x6c6   :  { %1615 = vsyncpa [#allocation5], 1 }
 0x6c7   :  { %1616 = vsyncpa [#allocation8], 1 }

</bundles_post_ra>
